<compile_context>
chip_gen: v7x
topology: tpu7x:2x2x1
jax: 0.10.0
libtpu: 0.0.40
codegen_flags: <defaults>
</compile_context>

<pallas_src>
import functools

import numpy as np
import jax
import jax.numpy as jnp
from jax.experimental import pallas as pl
from jax.experimental.pallas import tpu as pltpu


def _round_up(x, m):
    return (x + m - 1) // m * m


# ----------------------------------------------------------------------------
# Fused kernel: MaxUnpool2d(2,2) + Conv2d(3x3, SAME) + bias + ReLU, all batches.
# ----------------------------------------------------------------------------
def _up_fused_kernel(x_ref, q_ref, g_ref, b_ref, o_ref, a_ref, *, h_out):
    # x_ref: (B, H, W*Cin) f32        q_ref: (B, H, W*Cin) int8 quadrant codes
    # g_ref: (3*Kblk, W_out*Cout) bf16 (block-banded, 128-aligned ky blocks)
    # b_ref: (1, W_out*Cout) f32       o_ref: (B, 2, H_out//2, W_out*Cout) f32
    # a_ref: VMEM scratch (B*H_out, 3*Kblk) f32
    B, H, wc = x_ref.shape
    two_wc = 2 * wc
    kblk = a_ref.shape[1] // 3
    hh = h_out // 2

    # Valid unpooled rows (trace-time constants).
    tv = min(2 * H, h_out)
    hv0 = (tv + 1) // 2              # valid even full-res rows (dy == 0)
    hv1 = tv // 2                    # valid odd  full-res rows (dy == 1)

    # Unpool quadrant select: f32 compare/select on the VPU (cast to bf16 only at
    # the matmul boundary).
    x = x_ref[...]                                    # (B, H, wc)
    q = q_ref[...].astype(jnp.int32)

    def quad(code):
        return jnp.where(q == code, x, 0.0)

    # Pack the two column parities of each full-resolution row along the lane axis.
    v0 = jnp.concatenate([quad(0), quad(1)], axis=2)  # even full-res rows (B, H, 2wc)
    v1 = jnp.concatenate([quad(2), quad(3)], axis=2)  # odd  full-res rows (B, H, 2wc)

    # Zero A once: SAME-pad rows, zero-extension rows and the 128-alignment pad
    # lanes stay zero.  (Pad lanes multiply zero Gs rows, so only the row zeroing
    # is required for correctness.)
    # TODO(synk): at large H_out, zero only the handful of pad rows instead of all of A.
    a_ref[...] = jnp.zeros_like(a_ref)

    # Direct row/lane-slice stores (no big lane concats): the three conv row taps
    # (ky = 0,1,2) live at 128-aligned lane offsets 0, kblk, 2*kblk.
    # Even output rows r=2a tap unpool rows (2a-1, 2a, 2a+1) = (V1[a-1], V0[a], V1[a]);
    # odd  output rows r=2a+1 tap (2a, 2a+1, 2a+2)          = (V0[a], V1[a], V0[a+1]).
    m_e0 = min(hv1, hh - 1)                 # V1[a-1], a = 1..m_e0
    m_c = min(hv0, hh)                      # V0[a]
    m_d = min(hv1, hh)                      # V1[a]
    m_o2 = max(0, min(hv0, hh) - 1)         # V0[a+1]
    for b in range(B):                      # trace-time unrolled; B is small
        e0 = b * h_out                      # even-parity output rows of batch b
        o0 = e0 + hh                        # odd-parity output rows of batch b
        if m_e0 > 0:
            a_ref[e0 + 1:e0 + 1 + m_e0, 0:two_wc] = v1[b, 0:m_e0]
        if m_c > 0:
            a_ref[e0:e0 + m_c, kblk:kblk + two_wc] = v0[b, 0:m_c]
        if m_d > 0:
            a_ref[e0:e0 + m_d, 2 * kblk:2 * kblk + two_wc] = v1[b, 0:m_d]
        if m_c > 0:
            a_ref[o0:o0 + m_c, 0:two_wc] = v0[b, 0:m_c]
        if m_d > 0:
            a_ref[o0:o0 + m_d, kblk:kblk + two_wc] = v1[b, 0:m_d]
        if m_o2 > 0:
            a_ref[o0:o0 + m_o2, 2 * kblk:2 * kblk + two_wc] = v0[b, 1:1 + m_o2]

    # ONE MXU matmul for all batches: (B*H_out, 3*Kblk) x (3*Kblk, W_out*Cout),
    # bf16 operands, f32 accumulation.
    acc = jax.lax.dot_general(a_ref[...].astype(jnp.bfloat16), g_ref[...],
                              (((1,), (0,)), ((), ())),
                              preferred_element_type=jnp.float32)
    acc = jnp.maximum(acc + b_ref[...], 0.0)

    # Lane-dense store: (B, parity, Hh, W_out*Cout), last dim a multiple of 128.
    o_ref[...] = acc.reshape(o_ref.shape).astype(o_ref.dtype)


# ----------------------------------------------------------------------------
# Host-side parameter prep (pure numpy; call ONCE per (weights, shape) and reuse).
# Folds conv weights + W-interleave + SAME pad/crop into a block-banded matrix
# Gs: (3*Kblk, W_out*Cout) whose ky blocks are padded to 128-lane boundaries.
# ----------------------------------------------------------------------------
def prepare_up_params(w_hwio, bias, W, W_out):
    w = np.asarray(w_hwio, dtype=np.float32)        # (3, 3, Cin, Cout)
    b = np.asarray(bias, dtype=np.float32)          # (Cout,)
    Cin, Cout = w.shape[2], w.shape[3]
    wcin = W * Cin
    kblk = _round_up(2 * wcin, 128)
    gs = np.zeros((3, kblk, W_out * Cout), np.float32)
    for ky in range(3):
        for px in range(2):
            for j in range(W):
                cc = 2 * j + px                     # full-res unpool column
                if cc >= W_out:
                    continue                        # cropped column
                row0 = px * wcin + j * Cin
                for c in range(max(0, cc - 1), min(W_out, cc + 2)):
                    kx = cc - c + 1                 # conv tap along W
                    gs[ky, row0:row0 + Cin, c * Cout:(c + 1) * Cout] = w[ky, kx]
    gs = gs.reshape(3 * kblk, W_out * Cout)
    bias_packed = np.tile(b, W_out).reshape(1, W_out * Cout)
    # TODO(synk): for real decoder sizes, emit Gs per W_out column tile with only its
    # nonzero K band so an N-tiled grid never multiplies the structurally-zero band.
    return jnp.asarray(gs, jnp.bfloat16), jnp.asarray(bias_packed, jnp.float32)


# ----------------------------------------------------------------------------
# Wrapper: the `Up.forward` equivalent (NCHW in / NCHW out), jit-able.
# ----------------------------------------------------------------------------
@functools.partial(jax.jit, static_argnames=("h_out", "w_out"))
def up_forward(inputs_nchw, indices_nchw, gs, bias_packed, *, h_out, w_out):
    B, Cin, H, W = inputs_nchw.shape
    n_lanes = gs.shape[-1]
    Cout = n_lanes // w_out
    assert h_out % 2 == 0, "only even unpool output heights supported"
    hh = h_out // 2
    wc = W * Cin

    # Lane-pack activations: (B, H, W*Cin) f32 (layout plumbing, one XLA copy).
    x2 = jnp.transpose(inputs_nchw, (0, 2, 3, 1)).reshape(B, H, wc).astype(jnp.float32)

    # Shrink the index stream 4x: 2-bit quadrant code (dy*2 + dx) as int8.
    idx = indices_nchw.astype(jnp.int32)
    ii = jnp.arange(H, dtype=jnp.int32)[None, None, :, None]
    jj = jnp.arange(W, dtype=jnp.int32)[None, None, None, :]
    dy = idx // w_out - 2 * ii
    dx = idx % w_out - 2 * jj
    in_window = (dy >= 0) & (dy < 2) & (dx >= 0) & (dx < 2)
    code = jnp.where(in_window, dy * 2 + dx, 4).astype(jnp.int8)   # 4 -> dropped
    q2 = jnp.transpose(code, (0, 2, 3, 1)).reshape(B, H, wc)

    flops = 2 * 9 * B * h_out * w_out * Cin * Cout              # true conv FLOPs
    bytes_accessed = (x2.size * 4 + q2.size + gs.size * 2
                      + bias_packed.size * 4 + B * h_out * n_lanes * 4)

    # Single grid-less invocation: all B stacked into the matmul M dimension.
    # TODO(synk): for large layers add a "parallel" grid axis over W_out column tiles
    # (banded-K Gs via index_map, pl.Buffered(1) weights) for v7x's two TensorCores.
    out_packed = pl.pallas_call(
        functools.partial(_up_fused_kernel, h_out=h_out),
        out_shape=jax.ShapeDtypeStruct((B, 2, hh, n_lanes), jnp.float32),
        in_specs=[
            pl.BlockSpec(memory_space=pltpu.MemorySpace.VMEM),   # x (packed)
            pl.BlockSpec(memory_space=pltpu.MemorySpace.VMEM),   # quadrant codes
            pl.BlockSpec(memory_space=pltpu.MemorySpace.VMEM),   # Gs
            pl.BlockSpec(memory_space=pltpu.MemorySpace.VMEM),   # bias
        ],
        out_specs=pl.BlockSpec(memory_space=pltpu.MemorySpace.VMEM),
        scratch_shapes=[pltpu.VMEM((B * h_out, gs.shape[0]), jnp.float32)],
        compiler_params=pltpu.CompilerParams(vmem_limit_bytes=64 * 1024 * 1024),
        cost_estimate=pl.CostEstimate(flops=flops, transcendentals=0,
                                      bytes_accessed=bytes_accessed),
    )(x2, q2, gs, bias_packed)

    # Layout plumbing back to NCHW for module parity.  (A downstream Pallas stage
    # should instead consume the packed (B, 2, Hh, W_out*Cout) layout directly.)
    out5 = out_packed.reshape(B, 2, hh, w_out, Cout)        # (b, parity, a, c, co)
    return jnp.transpose(out5, (0, 4, 2, 1, 3)).reshape(B, Cout, h_out, w_out)


# ----------------------------------------------------------------------------
# Pure-JAX reference (for correctness check).
# ----------------------------------------------------------------------------
def up_forward_ref(x_nchw, idx_nchw, output_shape, w_hwio, bias):
    B, C, H, W = x_nchw.shape
    H_out, W_out = int(output_shape[-2]), int(output_shape[-1])
    un = jnp.zeros((B, C, H_out * W_out), jnp.float32)
    bb = jnp.arange(B)[:, None, None]
    cc = jnp.arange(C)[None, :, None]
    un = un.at[bb, cc, idx_nchw.reshape(B, C, H * W)].set(x_nchw.reshape(B, C, H * W))
    un = un.reshape(B, C, H_out, W_out)
    out = jax.lax.conv_general_dilated(
        un, w_hwio, window_strides=(1, 1), padding="SAME",
        dimension_numbers=("NCHW", "HWIO", "NCHW"))
    out = out + bias[None, :, None, None]
    return jnp.maximum(out, 0.0)


if __name__ == "__main__":
    B, Cin, Cout = 2, 4, 8
    H = W = 8
    H_out = W_out = 16
    output_shape = (B, Cin, H_out, W_out)

    key = jax.random.PRNGKey(0)
    k1, k2, k3, k4, k5 = jax.random.split(key, 5)

    inputs = jax.random.normal(k1, (B, Cin, H, W), jnp.float32)

    # Valid MaxPool2d(2,2,return_indices=True)-style indices: each input element
    # points at one of the 4 positions inside its own 2x2 output block.
    dy = jax.random.randint(k2, (B, Cin, H, W), 0, 2)
    dx = jax.random.randint(k3, (B, Cin, H, W), 0, 2)
    ii = jnp.arange(H)[:, None]
    jj = jnp.arange(W)[None, :]
    indices = ((2 * ii + dy) * W_out + (2 * jj + dx)).astype(jnp.int32)

    # Deterministic parameters for self.nn = Conv2d(Cin, Cout, 3, padding=1) + ReLU.
    w = jax.random.normal(k4, (3, 3, Cin, Cout), jnp.float32) * 0.1
    b = jax.random.normal(k5, (Cout,), jnp.float32) * 0.1

    # Host-side folding of the conv params, done ONCE and reused across calls.
    gs, bias_packed = prepare_up_params(np.asarray(w), np.asarray(b), W, W_out)

    out = up_forward(inputs, indices, gs, bias_packed, h_out=H_out, w_out=W_out)
    out = jax.block_until_ready(out)

    ref = up_forward_ref(inputs, indices, output_shape, w, b)
    assert out.shape == (B, Cout, H_out, W_out), out.shape
    # bf16 matmul operands with f32 accumulation -> ~1e-3 level error vs f32 ref.
    assert jnp.allclose(out, ref, atol=2e-2, rtol=2e-2), float(jnp.max(jnp.abs(out - ref)))

    print("KERNEL_OK")
</pallas_src>

<mosaic_0001>
module attributes {stable_mosaic.version = 11 : i64} {
  func.func @_up_fused_kernel(%arg0: memref<2x8x32xf32, #tpu.memory_space<vmem>>, %arg1: memref<2x8x32xi8, #tpu.memory_space<vmem>>, %arg2: memref<384x128xbf16, #tpu.memory_space<vmem>>, %arg3: memref<1x128xf32, #tpu.memory_space<vmem>>, %arg4: memref<2x2x8x128xf32, #tpu.memory_space<vmem>>, %arg5: memref<32x384xf32, #tpu.memory_space<vmem>>) attributes {dimension_semantics = [], scalar_prefetch = 0 : i64, scratch_operands = 1 : i64, tpu.core_type = #tpu.core_type<tc>} {
    %c0 = arith.constant 0 : index
    %c0_0 = arith.constant 0 : index
    %c0_1 = arith.constant 0 : index
    %0 = vector.load %arg0[%c0, %c0_0, %c0_1] : memref<2x8x32xf32, #tpu.memory_space<vmem>>, vector<2x8x32xf32>
    %c0_2 = arith.constant 0 : index
    %c0_3 = arith.constant 0 : index
    %c0_4 = arith.constant 0 : index
    %1 = vector.load %arg1[%c0_2, %c0_3, %c0_4] : memref<2x8x32xi8, #tpu.memory_space<vmem>>, vector<2x8x32xi8>
    %2 = arith.extsi %1 : vector<2x8x32xi8> to vector<2x8x32xi32>
    %c0_i32 = arith.constant 0 : i32
    %3 = vector.broadcast %c0_i32 : i32 to vector<2x8x32xi32>
    %4 = arith.cmpi eq, %2, %3 : vector<2x8x32xi32>
    %cst = arith.constant 0.000000e+00 : f32
    %5 = vector.broadcast %cst : f32 to vector<2x8x32xf32>
    %6 = arith.select %4, %0, %5 : vector<2x8x32xi1>, vector<2x8x32xf32>
    %c1_i32 = arith.constant 1 : i32
    %7 = vector.broadcast %c1_i32 : i32 to vector<2x8x32xi32>
    %8 = arith.cmpi eq, %2, %7 : vector<2x8x32xi32>
    %cst_5 = arith.constant 0.000000e+00 : f32
    %9 = vector.broadcast %cst_5 : f32 to vector<2x8x32xf32>
    %10 = arith.select %8, %0, %9 : vector<2x8x32xi1>, vector<2x8x32xf32>
    %11 = tpu.concatenate %6, %10 in 2 : vector<2x8x32xf32>, vector<2x8x32xf32> -> vector<2x8x64xf32>
    %c2_i32 = arith.constant 2 : i32
    %12 = vector.broadcast %c2_i32 : i32 to vector<2x8x32xi32>
    %13 = arith.cmpi eq, %2, %12 : vector<2x8x32xi32>
    %cst_6 = arith.constant 0.000000e+00 : f32
    %14 = vector.broadcast %cst_6 : f32 to vector<2x8x32xf32>
    %15 = arith.select %13, %0, %14 : vector<2x8x32xi1>, vector<2x8x32xf32>
    %c3_i32 = arith.constant 3 : i32
    %16 = vector.broadcast %c3_i32 : i32 to vector<2x8x32xi32>
    %17 = arith.cmpi eq, %2, %16 : vector<2x8x32xi32>
    %cst_7 = arith.constant 0.000000e+00 : f32
    %18 = vector.broadcast %cst_7 : f32 to vector<2x8x32xf32>
    %19 = arith.select %17, %0, %18 : vector<2x8x32xi1>, vector<2x8x32xf32>
    %20 = tpu.concatenate %15, %19 in 2 : vector<2x8x32xf32>, vector<2x8x32xf32> -> vector<2x8x64xf32>
    %cst_8 = arith.constant 0.000000e+00 : f32
    %21 = vector.broadcast %cst_8 : f32 to vector<32x384xf32>
    %c0_9 = arith.constant 0 : index
    %c0_10 = arith.constant 0 : index
    %22 = vector.load %arg5[%c0_9, %c0_10] : memref<32x384xf32, #tpu.memory_space<vmem>>, vector<32x384xf32>
    tpu.vector_store %arg5[%c0_9, %c0_10], %21 {strides = array<i32>} : memref<32x384xf32, #tpu.memory_space<vmem>>, vector<32x384xf32>,
    %23 = vector.extract_strided_slice %20 {offsets = [0, 0, 0], sizes = [1, 7, 64], strides = [1, 1, 1]} : vector<2x8x64xf32> to vector<1x7x64xf32>
    %24 = vector.shape_cast %23 : vector<1x7x64xf32> to vector<7x64xf32>
    %c1 = arith.constant 1 : index
    %c0_11 = arith.constant 0 : index
    %25 = vector.load %arg5[%c1, %c0_11] : memref<32x384xf32, #tpu.memory_space<vmem>>, vector<7x64xf32>
    tpu.vector_store %arg5[%c1, %c0_11], %24 {strides = array<i32>} : memref<32x384xf32, #tpu.memory_space<vmem>>, vector<7x64xf32>,
    %26 = vector.extract_strided_slice %11 {offsets = [0, 0, 0], sizes = [1, 8, 64], strides = [1, 1, 1]} : vector<2x8x64xf32> to vector<1x8x64xf32>
    %27 = vector.shape_cast %26 : vector<1x8x64xf32> to vector<8x64xf32>
    %c0_12 = arith.constant 0 : index
    %c128 = arith.constant 128 : index
    %28 = vector.load %arg5[%c0_12, %c128] : memref<32x384xf32, #tpu.memory_space<vmem>>, vector<8x64xf32>
    tpu.vector_store %arg5[%c0_12, %c128], %27 {strides = array<i32>} : memref<32x384xf32, #tpu.memory_space<vmem>>, vector<8x64xf32>,
    %29 = vector.extract_strided_slice %20 {offsets = [0, 0, 0], sizes = [1, 8, 64], strides = [1, 1, 1]} : vector<2x8x64xf32> to vector<1x8x64xf32>
    %30 = vector.shape_cast %29 : vector<1x8x64xf32> to vector<8x64xf32>
    %c0_13 = arith.constant 0 : index
    %c256 = arith.constant 256 : index
    %31 = vector.load %arg5[%c0_13, %c256] : memref<32x384xf32, #tpu.memory_space<vmem>>, vector<8x64xf32>
    tpu.vector_store %arg5[%c0_13, %c256], %30 {strides = array<i32>} : memref<32x384xf32, #tpu.memory_space<vmem>>, vector<8x64xf32>,
    %32 = vector.extract_strided_slice %11 {offsets = [0, 0, 0], sizes = [1, 8, 64], strides = [1, 1, 1]} : vector<2x8x64xf32> to vector<1x8x64xf32>
    %33 = vector.shape_cast %32 : vector<1x8x64xf32> to vector<8x64xf32>
    %c8 = arith.constant 8 : index
    %c0_14 = arith.constant 0 : index
    %34 = vector.load %arg5[%c8, %c0_14] : memref<32x384xf32, #tpu.memory_space<vmem>>, vector<8x64xf32>
    tpu.vector_store %arg5[%c8, %c0_14], %33 {strides = array<i32>} : memref<32x384xf32, #tpu.memory_space<vmem>>, vector<8x64xf32>,
    %35 = vector.extract_strided_slice %20 {offsets = [0, 0, 0], sizes = [1, 8, 64], strides = [1, 1, 1]} : vector<2x8x64xf32> to vector<1x8x64xf32>
    %36 = vector.shape_cast %35 : vector<1x8x64xf32> to vector<8x64xf32>
    %c8_15 = arith.constant 8 : index
    %c128_16 = arith.constant 128 : index
    %37 = vector.load %arg5[%c8_15, %c128_16] : memref<32x384xf32, #tpu.memory_space<vmem>>, vector<8x64xf32>
    tpu.vector_store %arg5[%c8_15, %c128_16], %36 {strides = array<i32>} : memref<32x384xf32, #tpu.memory_space<vmem>>, vector<8x64xf32>,
    %38 = vector.extract_strided_slice %11 {offsets = [0, 1, 0], sizes = [1, 7, 64], strides = [1, 1, 1]} : vector<2x8x64xf32> to vector<1x7x64xf32>
    %39 = vector.shape_cast %38 : vector<1x7x64xf32> to vector<7x64xf32>
    %c8_17 = arith.constant 8 : index
    %c256_18 = arith.constant 256 : index
    %40 = vector.load %arg5[%c8_17, %c256_18] : memref<32x384xf32, #tpu.memory_space<vmem>>, vector<7x64xf32>
    tpu.vector_store %arg5[%c8_17, %c256_18], %39 {strides = array<i32>} : memref<32x384xf32, #tpu.memory_space<vmem>>, vector<7x64xf32>,
    %41 = vector.extract_strided_slice %20 {offsets = [1, 0, 0], sizes = [1, 7, 64], strides = [1, 1, 1]} : vector<2x8x64xf32> to vector<1x7x64xf32>
    %42 = vector.shape_cast %41 : vector<1x7x64xf32> to vector<7x64xf32>
    %c17 = arith.constant 17 : index
    %c0_19 = arith.constant 0 : index
    %43 = vector.load %arg5[%c17, %c0_19] : memref<32x384xf32, #tpu.memory_space<vmem>>, vector<7x64xf32>
    tpu.vector_store %arg5[%c17, %c0_19], %42 {strides = array<i32>} : memref<32x384xf32, #tpu.memory_space<vmem>>, vector<7x64xf32>,
    %44 = vector.extract_strided_slice %11 {offsets = [1, 0, 0], sizes = [1, 8, 64], strides = [1, 1, 1]} : vector<2x8x64xf32> to vector<1x8x64xf32>
    %45 = vector.shape_cast %44 : vector<1x8x64xf32> to vector<8x64xf32>
    %c16 = arith.constant 16 : index
    %c128_20 = arith.constant 128 : index
    %46 = vector.load %arg5[%c16, %c128_20] : memref<32x384xf32, #tpu.memory_space<vmem>>, vector<8x64xf32>
    tpu.vector_store %arg5[%c16, %c128_20], %45 {strides = array<i32>} : memref<32x384xf32, #tpu.memory_space<vmem>>, vector<8x64xf32>,
    %47 = vector.extract_strided_slice %20 {offsets = [1, 0, 0], sizes = [1, 8, 64], strides = [1, 1, 1]} : vector<2x8x64xf32> to vector<1x8x64xf32>
    %48 = vector.shape_cast %47 : vector<1x8x64xf32> to vector<8x64xf32>
    %c16_21 = arith.constant 16 : index
    %c256_22 = arith.constant 256 : index
    %49 = vector.load %arg5[%c16_21, %c256_22] : memref<32x384xf32, #tpu.memory_space<vmem>>, vector<8x64xf32>
    tpu.vector_store %arg5[%c16_21, %c256_22], %48 {strides = array<i32>} : memref<32x384xf32, #tpu.memory_space<vmem>>, vector<8x64xf32>,
    %50 = vector.extract_strided_slice %11 {offsets = [1, 0, 0], sizes = [1, 8, 64], strides = [1, 1, 1]} : vector<2x8x64xf32> to vector<1x8x64xf32>
    %51 = vector.shape_cast %50 : vector<1x8x64xf32> to vector<8x64xf32>
    %c24 = arith.constant 24 : index
    %c0_23 = arith.constant 0 : index
    %52 = vector.load %arg5[%c24, %c0_23] : memref<32x384xf32, #tpu.memory_space<vmem>>, vector<8x64xf32>
    tpu.vector_store %arg5[%c24, %c0_23], %51 {strides = array<i32>} : memref<32x384xf32, #tpu.memory_space<vmem>>, vector<8x64xf32>,
    %53 = vector.extract_strided_slice %20 {offsets = [1, 0, 0], sizes = [1, 8, 64], strides = [1, 1, 1]} : vector<2x8x64xf32> to vector<1x8x64xf32>
    %54 = vector.shape_cast %53 : vector<1x8x64xf32> to vector<8x64xf32>
    %c24_24 = arith.constant 24 : index
    %c128_25 = arith.constant 128 : index
    %55 = vector.load %arg5[%c24_24, %c128_25] : memref<32x384xf32, #tpu.memory_space<vmem>>, vector<8x64xf32>
    tpu.vector_store %arg5[%c24_24, %c128_25], %54 {strides = array<i32>} : memref<32x384xf32, #tpu.memory_space<vmem>>, vector<8x64xf32>,
    %56 = vector.extract_strided_slice %11 {offsets = [1, 1, 0], sizes = [1, 7, 64], strides = [1, 1, 1]} : vector<2x8x64xf32> to vector<1x7x64xf32>
    %57 = vector.shape_cast %56 : vector<1x7x64xf32> to vector<7x64xf32>
    %c24_26 = arith.constant 24 : index
    %c256_27 = arith.constant 256 : index
    %58 = vector.load %arg5[%c24_26, %c256_27] : memref<32x384xf32, #tpu.memory_space<vmem>>, vector<7x64xf32>
    tpu.vector_store %arg5[%c24_26, %c256_27], %57 {strides = array<i32>} : memref<32x384xf32, #tpu.memory_space<vmem>>, vector<7x64xf32>,
    %c0_28 = arith.constant 0 : index
    %c0_29 = arith.constant 0 : index
    %59 = vector.load %arg5[%c0_28, %c0_29] : memref<32x384xf32, #tpu.memory_space<vmem>>, vector<32x384xf32>
    %60 = arith.truncf %59 : vector<32x384xf32> to vector<32x384xbf16>
    %c0_30 = arith.constant 0 : index
    %c0_31 = arith.constant 0 : index
    %61 = vector.load %arg2[%c0_30, %c0_31] : memref<384x128xbf16, #tpu.memory_space<vmem>>, vector<384x128xbf16>
    %cst_32 = arith.constant dense<0.000000e+00> : vector<32x128xf32>
    %62 = tpu.matmul %60, %61, %cst_32 {dimension_numbers = #tpu.dot_dimension_numbers<[1], [0], [0], [1], [0, 0, 1, 1], [], []>} : vector<32x384xbf16>, vector<384x128xbf16>, vector<32x128xf32> -> vector<32x128xf32>
    %c0_33 = arith.constant 0 : index
    %c0_34 = arith.constant 0 : index
    %63 = vector.load %arg3[%c0_33, %c0_34] : memref<1x128xf32, #tpu.memory_space<vmem>>, vector<1x128xf32>
    %64 = vector.broadcast %63 : vector<1x128xf32> to vector<32x128xf32>
    %65 = arith.addf %62, %64 : vector<32x128xf32>
    %cst_35 = arith.constant 0.000000e+00 : f32
    %66 = vector.broadcast %cst_35 : f32 to vector<32x128xf32>
    %67 = arith.maximumf %65, %66 : vector<32x128xf32>
    %68 = vector.shape_cast %67 : vector<32x128xf32> to vector<2x2x8x128xf32>
    %c0_36 = arith.constant 0 : index
    %c0_37 = arith.constant 0 : index
    %c0_38 = arith.constant 0 : index
    %c0_39 = arith.constant 0 : index
    %69 = vector.load %arg4[%c0_36, %c0_37, %c0_38, %c0_39] : memref<2x2x8x128xf32, #tpu.memory_space<vmem>>, vector<2x2x8x128xf32>
    tpu.vector_store %arg4[%c0_36, %c0_37, %c0_38, %c0_39], %68 {strides = array<i32>} : memref<2x2x8x128xf32, #tpu.memory_space<vmem>>, vector<2x2x8x128xf32>,
    return
  }
}

</mosaic_0001>

<bundles_post_ra>
// kernel: up_forward.1
= control target key start
LH: loop header
LB: loop body
LE: loop exit
PB: predicated region body
PF: predicated region fallthrough
CT: control target
= control target key end

     0   :  { %9 = vsyncpa [#allocation4], 0  ;;  %s864_s0 = inlined_call_operand.hbm [shape: f32[2,8,32], index: 0, kind: input, shape index: {}]   ;;  %s865_s1 = inlined_call_operand.hbm [shape: s8[2,8,32], index: 1, kind: input, shape index: {}]   ;;  %s866_s2 = inlined_call_operand.hbm [shape: bf16[384,128], index: 2, kind: input, shape index: {}]   ;;  %s867_s3 = inlined_call_operand.hbm [shape: f32[1,128], index: 3, kind: input, shape index: {}]   ;;  %s868_s4 = inlined_call_operand.hbm [shape: f32[2,2,8,128], index: 4, kind: output, shape index: {}]  }
   0x1   :  { %10 = vsyncpa [#allocation7], 0 }
   0x2   :  { %11 = vsyncpa [#allocation10], 0 }
   0x3   :  { %12 = vsyncpa [#allocation5], 0  ;;  %s737_s15 = smov [#allocation6]   ;;  %s619_s19 = scalar_lea.hbm %s865_s1, 64 }
   0x4   :  { %s30_s16 = sshll.u32 %s737_s15, 4  ;;  %p620_p0 = scmp.ne.s32.totalorder %s865_s1, %s619_s19  ;;  %s31_s16 = int_to_ptr.vmem [resolvable:$true] %s30_s16 }
   0x5   :  { %p623_p1 = scmp.lt.u32.totalorder %s619_s19, %s865_s1 }
   0x7   :  { %p625_p2 = pnand %p623_p1, %p620_p0 }
   0x9   :  { %628 = shalt.err (!%p625_p2)
}
   0xa   :  { %s629_s24 = scalar_lea.vmem %s31_s16, 64  ;;  %p634_p4 = scmp.lt.s32.totalorder %s31_s16, %s31_s16 }
   0xb   :  { %p630_p3 = scmp.ne.s32.totalorder %s31_s16, %s629_s24  ;;  %p635_p5 = scmp.lt.s32.totalorder %s629_s24, %s629_s24 }
   0xd   :  { %p636_p6 = por %p635_p5, %p634_p4 }
   0xf   :  { %p637_p7 = pnand %p636_p6, %p630_p3 }
  0x11   :  { %640 = shalt.err (!%p637_p7)
}
  0x12   :  { %s738_s25 = smov 32   ;;  %s739_s26 = smov 2  }
  0x13   :  { %36 = dma.hbm_to_vmem [thread:$0]  %s865_s1, 64, %s31_s16, [#allocation7], %s738_s25, %s738_s25, %s739_s26  }
  0x14   :  { %s740_s29 = smov [#allocation3]   ;;  %s641_s7 = scalar_lea.hbm %s864_s0, 256 }
  0x15   :  { %s18_s30 = sshll.u32 %s740_s29, 4  ;;  %p642_p8 = scmp.ne.s32.totalorder %s864_s0, %s641_s7  ;;  %s19_s30 = int_to_ptr.vmem [resolvable:$true] %s18_s30 }
  0x16   :  { %p645_p9 = scmp.lt.u32.totalorder %s641_s7, %s864_s0 }
  0x18   :  { %p647_p10 = pnand %p645_p9, %p642_p8 }
  0x1a   :  { %650 = shalt.err (!%p647_p10)
}
  0x1b   :  { %s651_s12 = scalar_lea.vmem %s19_s30, 256  ;;  %p656_p12 = scmp.lt.s32.totalorder %s19_s30, %s19_s30 }
  0x1c   :  { %p652_p11 = scmp.ne.s32.totalorder %s19_s30, %s651_s12  ;;  %p657_p13 = scmp.lt.s32.totalorder %s651_s12, %s651_s12 }
  0x1e   :  { %p658_p0 = por %p657_p13, %p656_p12 }
  0x20   :  { %p659_p1 = pnand %p658_p0, %p652_p11 }
  0x22   :  { %662 = shalt.err (!%p659_p1)
}
  0x23   :  { %s741_s1 = smov 128   ;;  %s742_s13 = smov 8  }
  0x24   :  { %24 = dma.hbm_to_vmem [thread:$0]  %s864_s0, 256, %s19_s30, [#allocation4], %s741_s1, %s741_s1, %s742_s13  }
  0x25   :  { %s743_s16 = smov [#allocation8]   ;;  %s663_s20 = scalar_lea.hbm %s866_s2, 3072 }
  0x26   :  { %s42_s17 = sshll.u32 %s743_s16, 4  ;;  %p664_p2 = scmp.ne.s32.totalorder %s866_s2, %s663_s20  ;;  %s43_s17 = int_to_ptr.vmem [resolvable:$true] %s42_s17 }
  0x27   :  { %p667_p3 = scmp.lt.u32.totalorder %s663_s20, %s866_s2 }
  0x29   :  { %p669_p4 = pnand %p667_p3, %p664_p2 }
  0x2b   :  { %672 = shalt.err (!%p669_p4)
}
  0x2c   :  { %s673_s26 = scalar_lea.vmem %s43_s17, 3072  ;;  %p678_p6 = scmp.lt.s32.totalorder %s43_s17, %s43_s17 }
  0x2d   :  { %p674_p5 = scmp.ne.s32.totalorder %s43_s17, %s673_s26  ;;  %p679_p7 = scmp.lt.s32.totalorder %s673_s26, %s673_s26 }
  0x2f   :  { %p680_p8 = por %p679_p7, %p678_p6 }
  0x31   :  { %p681_p9 = pnand %p680_p8, %p674_p5 }
  0x33   :  { %684 = shalt.err (!%p681_p9)
}
  0x34   :  { %s744_s0 = smov 64   ;;  %s745_s27 = smov 4  }
  0x35   :  { %48 = dma.hbm_to_vmem [thread:$0]  %s866_s2, 3072, %s43_s17, [#allocation7], %s744_s0, %s744_s0, %s745_s27  }
  0x36   :  { %s746_s30 = smov [#allocation9]   ;;  %s685_s8 = scalar_lea.hbm %s867_s3, 16 }
  0x37   :  { %s55_s5 = sshll.u32 %s746_s30, 4  ;;  %p686_p10 = scmp.ne.s32.totalorder %s867_s3, %s685_s8  ;;  %s56_s5 = int_to_ptr.vmem [resolvable:$true] %s55_s5 }
  0x38   :  { %p689_p11 = scmp.lt.u32.totalorder %s685_s8, %s867_s3 }
  0x3a   :  { %p691_p12 = pnand %p689_p11, %p686_p10 }
  0x3c   :  { %694 = shalt.err (!%p691_p12)
}
  0x3d   :  { %s695_s14 = scalar_lea.vmem %s56_s5, 16  ;;  %s699_s2 = scalar_lea.vmem %s56_s5, 32 }
  0x3e   :  { %p696_p13 = scmp.ne.s32.totalorder %s56_s5, %s695_s14  ;;  %p700_p0 = scmp.lt.s32.totalorder %s56_s5, %s56_s5 }
  0x3f   :  { %p701_p1 = scmp.lt.s32.totalorder %s699_s2, %s695_s14 }
  0x41   :  { %p702_p2 = por %p701_p1, %p700_p0 }
  0x43   :  { %p703_p3 = pnand %p702_p2, %p696_p13 }
  0x45   :  { %706 = shalt.err (!%p703_p3)
}
  0x46   :  { %58 = dma.hbm_to_vmem [thread:$0]  %s867_s3, 16, %s56_s5, [#allocation10]  }
  0x47   :  { %729 = dma.done.wait [#allocation4], 256  }
  0x48   :  { %730 = vsyncadd [#allocation4], 4294967040 }
  0x49   :  { %731 = dma.done.wait [#allocation7], 3136  }
  0x4a   :  { %732 = vsyncadd [#allocation7], 4294964160 }
  0x4b   :  { %733 = dma.done.wait [#allocation10], 16  }
  0x4c   :  { %734 = vsyncadd [#allocation10], 4294967280  ;;  %v747_v0 = vmov 0.0   ;;  %v72_v1 = vld [vmem:[#allocation3] sm:$0xff]  ;;  %v522_v2 = vld [vmem:[#allocation6] sm:$0xf]  }
  0x4d   :  { %115 = vst [vmem:[#allocation2] sm:$0xff] %v747_v0  ;;  %117 = vst [vmem:[#allocation2 + $0x10] sm:$0xff] %v747_v0  ;;  %v73_v3 = vld [vmem:[#allocation3 + $0x8] sm:$0xff]  ;;  %v523_v4 = vunpack.c.0.s8 %v522_v2  ;;  %v524_v5 = vunpack.c.1.s8 %v522_v2  ;;  %v595_v6 = vld [vmem:[#allocation8 + $0x40] sm:$0xff]   ;;  %vm94_vm8 = vcmask 261120   ;;  %vm132_vm9 = vcmask 523264  }
  0x4e   :  { %119 = vst [vmem:[#allocation2 + $0x20] sm:$0xff] %v747_v0  ;;  %116 = vst [vmem:[#allocation2 + $0x8] sm:$0xff] %v747_v0  ;;  %v596_v7 = vld [vmem:[#allocation8] sm:$0xff]   ;;  %525 = vmatprep.subr.bf16.mxu0 %v595_v6  ;;  %v598_v13 = vld [vmem:[#allocation8 + $0x48] sm:$0xff]   ;;  %vm130_vm10 = vcmask 523265   ;;  %vm140_vm11 = vcmask 522240  }
  0x4f   :  { %118 = vst [vmem:[#allocation2 + $0x18] sm:$0xff] %v747_v0  ;;  %120 = vst [vmem:[#allocation2 + $0x28] sm:$0xff] %v747_v0  ;;  %vm101_vm0 = vcmp.eq.s32.totalorder %v523_v4, 3  ;;  %vm102_vm1 = vcmp.eq.s32.totalorder %v524_v5, 3  ;;  %vm82_vm2 = vcmp.eq.s32.totalorder %v523_v4, 1  ;;  %vm83_vm3 = vcmp.eq.s32.totalorder %v524_v5, 1  ;;  %526 = vmatpush3.bf16.msra.mxu0 %v596_v7 }
  0x50   :  { %121 = vst [vmem:[#allocation2 + $0x30] sm:$0xff] %v747_v0  ;;  %122 = vst [vmem:[#allocation2 + $0x38] sm:$0xff] %v747_v0  ;;  %v103_v8 = vsel %vm101_vm0, %v72_v1, 0.0  ;;  %v104_v9 = vsel %vm102_vm1, %v73_v3, 0.0  ;;  %v84_v10 = vsel %vm82_vm2, %v72_v1, 0.0  ;;  %v85_v11 = vsel %vm83_vm3, %v73_v3, 0.0  ;;  %527 = vmatprep.subr.bf16.mxu0 %v598_v13 }
  0x51   :  { %123 = vst [vmem:[#allocation2 + $0x40] sm:$0xff] %v747_v0  ;;  %124 = vst [vmem:[#allocation2 + $0x48] sm:$0xff] %v747_v0  ;;  %107 = vrot.lane.b32.xlu0 %v103_v8, %s738_s25  ;;  %109 = vrot.lane.b32.xlu1 %v104_v9, %s738_s25  ;;  %v597_v12 = vld [vmem:[#allocation8 + $0x80] sm:$0xff]   ;;  %vm97_vm4 = vcmp.eq.s32.totalorder %v523_v4, 2  ;;  %v599_v15 = vld [vmem:[#allocation8 + $0x8] sm:$0xff]   ;;  %vm98_vm5 = vcmp.eq.s32.totalorder %v524_v5, 2 }
  0x52   :  { %125 = vst [vmem:[#allocation2 + $0x50] sm:$0xff] %v747_v0  ;;  %126 = vst [vmem:[#allocation2 + $0x58] sm:$0xff] %v747_v0  ;;  %v829_v14 = vsel %vm97_vm4, %v72_v1, 0.0  ;;  %563 = vmatprep.subr.bf16.mxu1 %v597_v12  ;;  %v600_v16 = vld [vmem:[#allocation8 + $0x88] sm:$0xff]   ;;  %v100_v17 = vsel %vm98_vm5, %v73_v3, 0.0  ;;  %v601_v18 = vld [vmem:[#allocation8 + $0x50] sm:$0xff]  }
  0x53   :  { %564 = vmatpush3.bf16.msra.mxu1 %v597_v12  ;;  %vm78_vm6 = vcmp.eq.s32.totalorder %v523_v4, 0  ;;  %528 = vmatpush3.bf16.msra.mxu0 %v599_v15  ;;  %v602_v19 = vld [vmem:[#allocation8 + $0x10] sm:$0xff]   ;;  %vm79_vm7 = vcmp.eq.s32.totalorder %v524_v5, 0  ;;  %v604_v22 = vld [vmem:[#allocation8 + $0x58] sm:$0xff]   ;;  %v607_v26 = vld [vmem:[#allocation8 + $0x60] sm:$0xff]   ;;  %s748_s3 = smov [#allocation11]  }
  0x54   :  { %565 = vmatprep.subr.bf16.mxu1 %v600_v16  ;;  %v833_v20 = vsel %vm78_vm6, %v72_v1, 0.0  ;;  %529 = vmatprep.subr.bf16.mxu0 %v601_v18  ;;  %v603_v21 = vld [vmem:[#allocation8 + $0x90] sm:$0xff]   ;;  %v81_v23 = vsel %vm79_vm7, %v73_v3, 0.0  ;;  %v605_v24 = vld [vmem:[#allocation8 + $0x18] sm:$0xff]   ;;  %v609_v27 = vld [vmem:[#allocation8 + $0xa0] sm:$0xff]  }
  0x55   :  { %88 = vrot.lane.b32.xlu0 %v84_v10, %s738_s25  ;;  %90 = vrot.lane.b32.xlu1 %v85_v11, %s738_s25  ;;  %v606_v25 = vld [vmem:[#allocation8 + $0x98] sm:$0xff]   ;;  %v608_v28 = vld [vmem:[#allocation8 + $0x20] sm:$0xff]   ;;  %v610_v29 = vld [vmem:[#allocation8 + $0x68] sm:$0xff]   ;;  %s482_s25 = sshll.u32 %s748_s3, 4  ;;  %s483_s25 = int_to_ptr.vmem [resolvable:$true] %s482_s25 }
  0x56   :  { %v612_v30 = vld [vmem:[#allocation8 + $0xa8] sm:$0xff]   ;;  %v613_v32 = vld [vmem:[#allocation8 + $0x70] sm:$0xff]   ;;  %v616_v35 = vld [vmem:[#allocation8 + $0x78] sm:$0xff]   ;;  %s707_s17 = scalar_lea.vmem %s483_s25, 512  ;;  %p712_p5 = scmp.lt.s32.totalorder %s483_s25, %s483_s25 }
  0x57   :  { %566 = vmatpush3.bf16.msra.mxu1 %v600_v16  ;;  %530 = vmatpush3.bf16.msra.mxu0 %v602_v19  ;;  %v611_v31 = vld [vmem:[#allocation8 + $0x28] sm:$0xff]   ;;  %v615_v33 = vld [vmem:[#allocation8 + $0xb0] sm:$0xff]   ;;  %v618_v36 = vld [vmem:[#allocation8 + $0xb8] sm:$0xff]   ;;  %p708_p4 = scmp.ne.s32.totalorder %s483_s25, %s707_s17  ;;  %p713_p6 = scmp.lt.s32.totalorder %s707_s17, %s707_s17 }
  0x58   :  { %567 = vmatprep.subr.bf16.mxu1 %v603_v21  ;;  %531 = vmatprep.subr.bf16.mxu0 %v604_v22  ;;  %v614_v34 = vld [vmem:[#allocation8 + $0x30] sm:$0xff]   ;;  %v617_v37 = vld [vmem:[#allocation8 + $0x38] sm:$0xff]   ;;  %v496_v6 = vld [vmem:[#allocation9] ss:$0 sm:$0xff] }
  0x59   :  { %p714_p7 = por %p713_p6, %p712_p5 }
  0x5b   :  { %568 = vmatpush3.bf16.msra.mxu1 %v603_v21  ;;  %532 = vmatpush3.bf16.msra.mxu0 %v605_v24  ;;  %p715_p8 = pnand %p714_p7, %p708_p4 }
  0x5c   :  { %569 = vmatprep.subr.bf16.mxu1 %v606_v25  ;;  %533 = vmatprep.subr.bf16.mxu0 %v607_v26 }
  0x5f   :  { %570 = vmatpush3.bf16.msra.mxu1 %v606_v25  ;;  %534 = vmatpush3.bf16.msra.mxu0 %v608_v28 }
  0x60   :  { %571 = vmatprep.subr.bf16.mxu1 %v609_v27  ;;  %535 = vmatprep.subr.bf16.mxu0 %v610_v29 }
  0x63   :  { %572 = vmatpush3.bf16.msra.mxu1 %v609_v27  ;;  %536 = vmatpush3.bf16.msra.mxu0 %v611_v31 }
  0x64   :  { %573 = vmatprep.subr.bf16.mxu1 %v612_v30  ;;  %537 = vmatprep.subr.bf16.mxu0 %v613_v32 }
  0x67   :  { %574 = vmatpush3.bf16.msra.mxu1 %v612_v30  ;;  %538 = vmatpush3.bf16.msra.mxu0 %v614_v34 }
  0x68   :  { %575 = vmatprep.subr.bf16.mxu1 %v615_v33  ;;  %539 = vmatprep.subr.bf16.mxu0 %v616_v35 }
  0x6b   :  { %576 = vmatpush3.bf16.msra.mxu1 %v615_v33  ;;  %540 = vmatpush3.bf16.msra.mxu0 %v617_v37 }
  0x6c   :  { %577 = vmatprep.subr.bf16.mxu1 %v618_v36 }
  0x6f   :  { %578 = vmatpush3.bf16.msra.mxu1 %v618_v36 }
  0xc3   :  { %v108_v38 = vpop.permute.xlu0 %107  ;;  %v110_v39 = vpop.permute.xlu1 %109 }
  0xc4   :  { %v113_v40 = vsel %vm94_vm8, %v829_v14, %v108_v38  ;;  %v114_v41 = vsel %vm94_vm8, %v100_v17, %v110_v39 }
  0xc5   :  { %v128_v42 = vrot.slane %v113_v40, 7  ;;  %134 = vst.msk [vmem:[#allocation2 + $0x10] sm:$0xff] %vm132_vm9, %v113_v40  ;;  %136 = vst.msk [vmem:[#allocation2 + $0x20] sm:$0xff] %vm132_vm9, %v113_v40  ;;  %v143_v43 = vrot.slane %v114_v41, 7 }
  0xc6   :  { %147 = vst.msk [vmem:[#allocation2 + $0x40] sm:$0xff] %vm132_vm9, %v114_v41  ;;  %149 = vst.msk [vmem:[#allocation2 + $0x50] sm:$0xff] %vm132_vm9, %v114_v41 }
  0xc7   :  { %131 = vst.msk [vmem:[#allocation2] sm:$0xfe] %vm130_vm10, %v128_v42  ;;  %145 = vst.msk [vmem:[#allocation2 + $0x30] sm:$0xfe] %vm130_vm10, %v143_v43  ;;  %v89_v44 = vpop.permute.xlu0 %88  ;;  %v91_v45 = vpop.permute.xlu1 %90 }
  0xc8   :  { %v95_v46 = vsel %vm94_vm8, %v833_v20, %v89_v44  ;;  %v96_v47 = vsel %vm94_vm8, %v81_v23, %v91_v45 }
  0xc9   :  { %133 = vst.msk [vmem:[#allocation2 + $0x8] sm:$0xff] %vm132_vm9, %v95_v46  ;;  %135 = vst.msk [vmem:[#allocation2 + $0x18] sm:$0xff] %vm132_vm9, %v95_v46  ;;  %v138_v48 = vrot.slane %v95_v46, 1  ;;  %v151_v49 = vrot.slane %v96_v47, 1 }
  0xca   :  { %146 = vst.msk [vmem:[#allocation2 + $0x38] sm:$0xff] %vm132_vm9, %v96_v47  ;;  %148 = vst.msk [vmem:[#allocation2 + $0x48] sm:$0xff] %vm132_vm9, %v96_v47 }
  0xcb   :  { %141 = vst.msk [vmem:[#allocation2 + $0x28] sm:$0x7f] %vm140_vm11, %v138_v48  ;;  %153 = vst.msk [vmem:[#allocation2 + $0x58] sm:$0x7f] %vm140_vm11, %v151_v49 }
  0xcc   :  { %v158_v51 = vld [vmem:[#allocation2 + $0x20] sm:$0xff]  ;;  %v156_v60 = vld [vmem:[#allocation2 + $0x10] sm:$0xff] }
  0xcd   :  { %v164_v50 = vld [vmem:[#allocation2 + $0x50] sm:$0xff]  ;;  %v162_v53 = vld [vmem:[#allocation2 + $0x40] sm:$0xff] }
  0xce   :  { %v154_v52 = vld [vmem:[#allocation2] sm:$0xff]  ;;  %v160_v1 = vld [vmem:[#allocation2 + $0x30] sm:$0xff] }
  0xd0   :  { %v155_v54 = vld [vmem:[#allocation2 + $0x8] sm:$0xff]  ;;  %v157_v55 = vld [vmem:[#allocation2 + $0x18] sm:$0xff] }
  0xd1   :  { %v161_v56 = vld [vmem:[#allocation2 + $0x38] sm:$0xff]  ;;  %v167_v57 = vpack.c.bf16 %v158_v51, %v155_v54  ;;  %v166_v58 = vpack.c.bf16 %v157_v55, %v154_v52  ;;  %v163_v2 = vld [vmem:[#allocation2 + $0x48] sm:$0xff] }
  0xd2   :  { %v170_v59 = vpack.c.bf16 %v164_v50, %v161_v56  ;;  %v159_v61 = vld [vmem:[#allocation2 + $0x28] sm:$0xff]  ;;  %v165_v62 = vld [vmem:[#allocation2 + $0x58] sm:$0xff]  ;;  %v169_v3 = vpack.c.bf16 %v163_v2, %v160_v1 }
  0xd3   :  { %403 = vmatprep.mubr.bf16.mxu0 %v167_v57  ;;  %v168_v63 = vpack.c.bf16 %v159_v61, %v156_v60  ;;  %v171_v0 = vpack.c.bf16 %v165_v62, %v162_v53 }
  0xd4   :  { %404 = vmatmul.mubr.bf16.vlgmr.msra.gmra.mrb[0].mxu0 %v166_v58 }
  0xd5   :  { %579 = vmatprep.mubr.bf16.mxu1 %v168_v63  ;;  %411 = vmatprep.mubr.bf16.mxu0 %v170_v59 }
  0xd6   :  { %580 = vmatmul.mubr.bf16.vlgmr.msra.gmra.mrb[0].mxu1 %v171_v0 }
  0xdc   :  { %412 = vmatmul.mubr.bf16.gmra.mrb[4].mxu0 %v169_v3 }
 0x1a7   :  { %v541_v4 = vpop.f32.mrb[0].mxu0 }
 0x1a8   :  { %v542_v5 = vpop.f32.mrb[1].mxu0 }
 0x1a9   :  { %v543_v7 = vadd.f32 %v542_v5, %v541_v4  ;;  %v544_v8 = vpop.f32.mrb[2].mxu0  ;;  %v581_v9 = vpop.f32.mrb[0].mxu1 }
 0x1aa   :  { %v545_v10 = vpop.f32.mrb[3].mxu0  ;;  %v454_v11 = vpop.f32.mrb[1].mxu1 }
 0x1ab   :  { %v546_v12 = vadd.f32 %v545_v10, %v544_v8  ;;  %v406_v13 = vadd.f32 %v543_v7, %v496_v6  ;;  %v582_v14 = vpop.f32.mrb[2].mxu1 }
 0x1ac   :  { %v457_v15 = vpop.f32.mrb[3].mxu1 }
 0x1ad   :  { %v455_v16 = vadd.f32 %v454_v11, %v406_v13  ;;  %v409_v17 = vadd.f32 %v546_v12, %v496_v6 }
 0x1af   :  { %v469_v18 = vmax.f32 %v455_v16, 0.0  ;;  %v458_v19 = vadd.f32 %v457_v15, %v409_v17  ;;  %v547_v20 = vpop.f32.mrb[4].mxu0 }
 0x1b0   :  { %v548_v21 = vpop.f32.mrb[5].mxu0 }
 0x1b1   :  { %473 = vst [vmem:[#allocation11] sm:$0xff] %v469_v18  ;;  %v470_v22 = vmax.f32 %v458_v19, 0.0  ;;  %v549_v23 = vadd.f32 %v548_v21, %v547_v20  ;;  %v550_v24 = vpop.f32.mrb[6].mxu0 }
 0x1b2   :  { %v551_v25 = vpop.f32.mrb[7].mxu0 }
 0x1b3   :  { %474 = vst [vmem:[#allocation11 + $0x8] sm:$0xff] %v470_v22  ;;  %v414_v26 = vadd.f32 %v549_v23, %v496_v6  ;;  %v552_v27 = vadd.f32 %v551_v25, %v550_v24 }
 0x1b5   :  { %v463_v28 = vadd.f32 %v581_v9, %v414_v26  ;;  %v417_v29 = vadd.f32 %v552_v27, %v496_v6 }
 0x1b7   :  { %v471_v30 = vmax.f32 %v463_v28, 0.0  ;;  %v466_v31 = vadd.f32 %v582_v14, %v417_v29 }
 0x1b9   :  { %475 = vst [vmem:[#allocation11 + $0x10] sm:$0xff] %v471_v30  ;;  %v472_v32 = vmax.f32 %v466_v31, 0.0 }
 0x1bb   :  { %476 = vst [vmem:[#allocation11 + $0x18] sm:$0xff] %v472_v32 }
 0x1bc   :  { %718 = shalt.err (!%p715_p8)
}
 0x1bd   :  { %s719_s20 = scalar_lea.hbm %s868_s4, 512 }
 0x1be   :  { %p720_p9 = scmp.ne.s32.totalorder %s868_s4, %s719_s20  ;;  %p723_p10 = scmp.lt.u32.totalorder %s719_s20, %s868_s4 }
 0x1c0   :  { %p725_p11 = pnand %p723_p10, %p720_p9 }
 0x1c2   :  { %728 = shalt.err (!%p725_p11)
}
 0x1c3   :  { %488 = dma.vmem_to_hbm [thread:$0]  %s483_s25, 512, %s868_s4, [#allocation5], %s741_s1, %s741_s1, %s742_s13  }
 0x1c4   :  { %735 = dma.done.wait [#allocation5], 512  }
 0x1c5   :  { %736 = vsyncadd [#allocation5], 4294966784 }
 0x1c6   :  { %492 = vsyncpa [#allocation4], 1 }
 0x1c7   :  { %493 = vsyncpa [#allocation7], 1 }
 0x1c8   :  { %494 = vsyncpa [#allocation10], 1 }
 0x1c9   :  { %495 = vsyncpa [#allocation5], 1 }

</bundles_post_ra>
